<compile_context>
chip_gen: v7x
topology: tpu7x:2x2x1
jax: 0.10.0
libtpu: 0.0.40
codegen_flags: <defaults>
</compile_context>

<pallas_src>
import jax
import jax.numpy as jnp
from jax.experimental import pallas as pl
from jax.experimental.pallas import tpu as pltpu


def _dqn_fused_kernel(x_ref, w1_ref, b1_ref, w2_ref, b2_ref, o_ref):
    """Both networks in one pass:
       h   = relu(x @ W1_cat + b1_cat)          # (B, 2H)
       out = h @ W2_blockdiag + b2_cat          # (B, 2A)  [q | target]
    """
    h = jnp.dot(x_ref[...], w1_ref[...], preferred_element_type=jnp.float32)
    h = jnp.maximum(h + b1_ref[...], 0.0)
    o = jnp.dot(h, w2_ref[...], preferred_element_type=jnp.float32)
    o_ref[...] = o + b2_ref[...]


def dqn_forward(state, w1_cat, b1_cat, w2_bd, b2_cat, action_size):
    """Fused evaluation of q_net and target in a single pallas_call.

    state:  (B, S)   f32
    w1_cat: (S, 2H)  f32   b1_cat: (1, 2H) f32
    w2_bd:  (2H, 2A) f32   b2_cat: (1, 2A) f32   (block-diagonal second layer)
    Returns (q_out, target_out), each (B, A) float32.
    """
    B, S = state.shape
    two_h = w1_cat.shape[-1]
    two_a = w2_bd.shape[-1]

    flops = 2 * B * (S * two_h + two_h * two_a)
    bytes_accessed = (
        sum(int(p.size) * p.dtype.itemsize
            for p in (state, w1_cat, b1_cat, w2_bd, b2_cat))
        + B * two_a * 4)

    vmem_spec = pl.BlockSpec(memory_space=pltpu.MemorySpace.VMEM)
    out = pl.pallas_call(
        _dqn_fused_kernel,
        out_shape=jax.ShapeDtypeStruct((B, two_a), jnp.float32),
        in_specs=[vmem_spec] * 5,
        out_specs=vmem_spec,
        cost_estimate=pl.CostEstimate(
            flops=flops, transcendentals=0, bytes_accessed=bytes_accessed),
    )(state, w1_cat, b1_cat, w2_bd, b2_cat)

    # TODO(synk): if batch grows far beyond the MXU row count, tile B with a
    # grid and keep the lane-contiguous (B, 2A) output layout.
    return out[:, :action_size], out[:, action_size:]


def init_linear_params(key, in_features, out_features):
    """Deterministic init mimicking torch.nn.Linear's uniform(-1/sqrt(in), 1/sqrt(in))."""
    kw, kb = jax.random.split(key)
    bound = 1.0 / jnp.sqrt(jnp.float32(in_features))
    # Stored as (in, out) so the kernel can do x @ W directly.
    w = jax.random.uniform(kw, (in_features, out_features), jnp.float32, -bound, bound)
    b = jax.random.uniform(kb, (1, out_features), jnp.float32, -bound, bound)
    return w, b


def fuse_networks(q_params, target_params):
    """Pack q_net / target params for the fused kernel.

    First layers are concatenated along the output-feature axis; second layers
    are laid out block-diagonally so one matmul produces [q | target].
    All parameters stay float32 (bit-faithful to the PyTorch module).
    """
    qw1, qb1, qw2, qb2 = q_params
    tw1, tb1, tw2, tb2 = target_params
    H, A = qw2.shape

    w1_cat = jnp.concatenate([qw1, tw1], axis=1)          # (S, 2H)
    b1_cat = jnp.concatenate([qb1, tb1], axis=1)          # (1, 2H)
    w2_bd = jnp.zeros((2 * H, 2 * A), jnp.float32)
    w2_bd = w2_bd.at[:H, :A].set(qw2)
    w2_bd = w2_bd.at[H:, A:].set(tw2)                     # (2H, 2A) block-diag
    b2_cat = jnp.concatenate([qb2, tb2], axis=1)          # (1, 2A)
    return w1_cat, b1_cat, w2_bd, b2_cat


def reference_forward(state, w1, b1, w2, b2):
    """Pure-JAX f32 reference matching the PyTorch module's math."""
    h = jnp.maximum(state @ w1 + b1, 0.0)
    return h @ w2 + b2


if __name__ == "__main__":
    # Shapes consistent with the module: hidden_layer_size=256,
    # batch = replay_buffer_batch_size = 32.
    batch = 32
    state_size = 16
    action_size = 4
    hidden = 256

    key = jax.random.PRNGKey(0)
    k_state, k_l1, k_l2 = jax.random.split(key, 3)

    state = jax.random.normal(k_state, (batch, state_size), jnp.float32)

    # q_net parameters.
    w1, b1 = init_linear_params(k_l1, state_size, hidden)
    w2, b2 = init_linear_params(k_l2, hidden, action_size)
    q_params = (w1, b1, w2, b2)
    # target.load_state_dict(self.q_net.state_dict()) -> identical copy at init.
    target_params = tuple(jnp.array(p) for p in q_params)

    w1_cat, b1_cat, w2_bd, b2_cat = fuse_networks(q_params, target_params)

    q_out, t_out = dqn_forward(state, w1_cat, b1_cat, w2_bd, b2_cat, action_size)
    jax.block_until_ready((q_out, t_out))

    # Correctness vs a pure-JAX float32 reference.
    ref_q = reference_forward(state, *q_params)
    ref_t = reference_forward(state, *target_params)
    assert q_out.shape == (batch, action_size)
    assert t_out.shape == (batch, action_size)
    assert jnp.allclose(q_out, ref_q, atol=1e-5, rtol=1e-5), \
        float(jnp.max(jnp.abs(q_out - ref_q)))
    assert jnp.allclose(t_out, ref_t, atol=1e-5, rtol=1e-5), \
        float(jnp.max(jnp.abs(t_out - ref_t)))

    print("KERNEL_OK")
</pallas_src>

<mosaic_0001>
module attributes {stable_mosaic.version = 11 : i64} {
  func.func @_dqn_fused_kernel(%arg0: memref<32x16xf32, #tpu.memory_space<vmem>>, %arg1: memref<16x512xf32, #tpu.memory_space<vmem>>, %arg2: memref<1x512xf32, #tpu.memory_space<vmem>>, %arg3: memref<512x8xf32, #tpu.memory_space<vmem>>, %arg4: memref<1x8xf32, #tpu.memory_space<vmem>>, %arg5: memref<32x8xf32, #tpu.memory_space<vmem>>) attributes {dimension_semantics = [], scalar_prefetch = 0 : i64, scratch_operands = 0 : i64, tpu.core_type = #tpu.core_type<tc>} {
    %c0 = arith.constant 0 : index
    %c0_0 = arith.constant 0 : index
    %0 = vector.load %arg0[%c0, %c0_0] : memref<32x16xf32, #tpu.memory_space<vmem>>, vector<32x16xf32>
    %c0_1 = arith.constant 0 : index
    %c0_2 = arith.constant 0 : index
    %1 = vector.load %arg1[%c0_1, %c0_2] : memref<16x512xf32, #tpu.memory_space<vmem>>, vector<16x512xf32>
    %cst = arith.constant dense<0.000000e+00> : vector<32x512xf32>
    %2 = tpu.matmul %0, %1, %cst {dimension_numbers = #tpu.dot_dimension_numbers<[1], [0], [0], [1], [0, 0, 1, 1], [], []>} : vector<32x16xf32>, vector<16x512xf32>, vector<32x512xf32> -> vector<32x512xf32>
    %c0_3 = arith.constant 0 : index
    %c0_4 = arith.constant 0 : index
    %3 = vector.load %arg2[%c0_3, %c0_4] : memref<1x512xf32, #tpu.memory_space<vmem>>, vector<1x512xf32>
    %4 = vector.broadcast %3 : vector<1x512xf32> to vector<32x512xf32>
    %5 = arith.addf %2, %4 : vector<32x512xf32>
    %cst_5 = arith.constant 0.000000e+00 : f32
    %6 = vector.broadcast %cst_5 : f32 to vector<32x512xf32>
    %7 = arith.maximumf %5, %6 : vector<32x512xf32>
    %c0_6 = arith.constant 0 : index
    %c0_7 = arith.constant 0 : index
    %8 = vector.load %arg3[%c0_6, %c0_7] : memref<512x8xf32, #tpu.memory_space<vmem>>, vector<512x8xf32>
    %cst_8 = arith.constant dense<0.000000e+00> : vector<32x8xf32>
    %9 = tpu.matmul %7, %8, %cst_8 {dimension_numbers = #tpu.dot_dimension_numbers<[1], [0], [0], [1], [0, 0, 1, 1], [], []>} : vector<32x512xf32>, vector<512x8xf32>, vector<32x8xf32> -> vector<32x8xf32>
    %c0_9 = arith.constant 0 : index
    %c0_10 = arith.constant 0 : index
    %10 = vector.load %arg4[%c0_9, %c0_10] : memref<1x8xf32, #tpu.memory_space<vmem>>, vector<1x8xf32>
    %11 = vector.broadcast %10 : vector<1x8xf32> to vector<32x8xf32>
    %12 = arith.addf %9, %11 : vector<32x8xf32>
    %c0_11 = arith.constant 0 : index
    %c0_12 = arith.constant 0 : index
    %13 = vector.load %arg5[%c0_11, %c0_12] : memref<32x8xf32, #tpu.memory_space<vmem>>, vector<32x8xf32>
    tpu.vector_store %arg5[%c0_11, %c0_12], %12 {strides = array<i32>} : memref<32x8xf32, #tpu.memory_space<vmem>>, vector<32x8xf32>,
    return
  }
}

</mosaic_0001>

<bundles_post_ra>
// kernel: tpu_custom_call.1
= control target key start
LH: loop header
LB: loop body
LE: loop exit
PB: predicated region body
PF: predicated region fallthrough
CT: control target
= control target key end

     0   :  { %v681_v3 = vmov 0.0   ;;  %vm54_vm0 = vcmask 130048   ;;  %vm502_vm1 = vcmask 64512   ;;  %s978_s1 = inlined_call_operand.vmem [shape: f32[16,512], index: 1, kind: input, shape index: {}]   ;;  %s979_s0 = inlined_call_operand.vmem [shape: f32[32,16], index: 0, kind: input, shape index: {}]   ;;  %s980_s3 = inlined_call_operand.vmem [shape: f32[512,8], index: 3, kind: input, shape index: {}]   ;;  %s981_s2 = inlined_call_operand.vmem [shape: f32[1,512], index: 2, kind: input, shape index: {}]   ;;  %s982_s4 = inlined_call_operand.vmem [shape: f32[1,8], index: 4, kind: input, shape index: {}]   ;;  %s983_s5 = inlined_call_operand.vmem [shape: f32[32,8], index: 5, kind: output, shape index: {}]  }
   0x1   :  { %v25_v0 = vld [vmem:[%s978_s1 + $0x8] sm:$0xff]  ;;  %v27_v2 = vld [vmem:[%s978_s1 + $0x18] sm:$0xff]  ;;  %131 = vmatprep.mubr.f32.mxu0 %v681_v3  ;;  %220 = vmatprep.mubr.f32.mxu1 %v681_v3  ;;  %v24_v6 = vld [vmem:[%s978_s1] sm:$0xff] }
   0x2   :  { %v29_v1 = vld [vmem:[%s978_s1 + $0x28] sm:$0xff]  ;;  %v31_v5 = vld [vmem:[%s978_s1 + $0x38] sm:$0xff]  ;;  %v28_v7 = vld [vmem:[%s978_s1 + $0x20] sm:$0xff] }
   0x3   :  { %v608_v4 = vpack.c.bf16 %v29_v1, %v25_v0  ;;  %v612_v8 = vpack.c.bf16 %v31_v5, %v27_v2  ;;  %v610_v9 = vpack.c.bf16 %v28_v7, %v24_v6  ;;  %v26_v10 = vld [vmem:[%s978_s1 + $0x10] sm:$0xff]  ;;  %v20_v13 = vld [vmem:[%s979_s0] sm:$0xff]  ;;  %v278_v15 = vld [vmem:[%s980_s3 + $0x88] sm:$0xff] }
   0x4   :  { %v30_v11 = vld [vmem:[%s978_s1 + $0x30] sm:$0xff]  ;;  %v277_v14 = vld [vmem:[%s980_s3 + $0x80] sm:$0xff]  ;;  %v310_v18 = vld [vmem:[%s980_s3 + $0x188] sm:$0xff] }
   0x5   :  { %609 = vmatprep.subr.bf16.mxu0 %v608_v4  ;;  %v614_v12 = vpack.c.bf16 %v30_v11, %v26_v10  ;;  %613 = vmatprep.subr.bf16.mxu1 %v612_v8  ;;  %v309_v16 = vld [vmem:[%s980_s3 + $0x180] sm:$0xff]  ;;  %v616_v17 = vpack.c.bf16 %v278_v15, %v277_v14  ;;  %v262_v20 = vld [vmem:[%s980_s3 + $0x8] sm:$0xff]  ;;  %v279_v26 = vld [vmem:[%s980_s3 + $0x90] sm:$0xff] }
   0x6   :  { %611 = vmatpush1.bf16.msra.mxu0 %v610_v9  ;;  %v261_v19 = vld [vmem:[%s980_s3] sm:$0xff]  ;;  %v21_v21 = vld [vmem:[%s979_s0 + $0x8] sm:$0xff]  ;;  %v648_v22 = vpack.c.bf16 %v310_v18, %v309_v16  ;;  %v280_v28 = vld [vmem:[%s980_s3 + $0x98] sm:$0xff] }
   0x7   :  { %615 = vmatpush1.bf16.msra.mxu1 %v614_v12  ;;  %v618_v23 = vpack.c.bf16 %v262_v20, %v261_v19  ;;  %v293_v24 = vld [vmem:[%s980_s3 + $0x100] sm:$0xff]  ;;  %v294_v25 = vld [vmem:[%s980_s3 + $0x108] sm:$0xff]  ;;  %617 = vmatprep.subr.bf16.mxu0 %v616_v17  ;;  %v311_v29 = vld [vmem:[%s980_s3 + $0x190] sm:$0xff]  ;;  %v620_v31 = vpack.c.bf16 %v280_v28, %v279_v26 }
   0x8   :  { %v650_v27 = vpack.c.bf16 %v294_v25, %v293_v24  ;;  %v312_v30 = vld [vmem:[%s980_s3 + $0x198] sm:$0xff]  ;;  %v263_v32 = vld [vmem:[%s980_s3 + $0x10] sm:$0xff]  ;;  %649 = vmatprep.subr.bf16.mxu1 %v648_v22  ;;  %v281_v37 = vld [vmem:[%s980_s3 + $0xa0] sm:$0xff] }
   0x9   :  { %511 = vmatmul.mubr.msk.f32.vlgmr.msra.gmra.mrb[0].mxu0 %vm54_vm0, %v20_v13  ;;  %v264_v33 = vld [vmem:[%s980_s3 + $0x18] sm:$0xff]  ;;  %v295_v34 = vld [vmem:[%s980_s3 + $0x110] sm:$0xff]  ;;  %v652_v35 = vpack.c.bf16 %v312_v30, %v311_v29  ;;  %v282_v38 = vld [vmem:[%s980_s3 + $0xa8] sm:$0xff] }
   0xa   :  { %515 = vmatmul.mubr.msk.f32.vlgmr.msra.gmra.mrb[0].mxu1 %vm54_vm0, %v20_v13  ;;  %137 = vmatprep.mubr.f32.mxu0 %v681_v3  ;;  %v296_v36 = vld [vmem:[%s980_s3 + $0x118] sm:$0xff]  ;;  %v622_v39 = vpack.c.bf16 %v264_v33, %v263_v32  ;;  %v313_v41 = vld [vmem:[%s980_s3 + $0x1a0] sm:$0xff]  ;;  %v314_v42 = vld [vmem:[%s980_s3 + $0x1a8] sm:$0xff]  ;;  %v624_v44 = vpack.c.bf16 %v282_v38, %v281_v37 }
   0xb   :  { %226 = vmatprep.mubr.f32.mxu1 %v681_v3  ;;  %619 = vmatpush3.bf16.msra.mxu0 %v618_v23  ;;  %v654_v40 = vpack.c.bf16 %v296_v36, %v295_v34  ;;  %v265_v43 = vld [vmem:[%s980_s3 + $0x20] sm:$0xff]  ;;  %v266_v45 = vld [vmem:[%s980_s3 + $0x28] sm:$0xff]  ;;  %v22_v48 = vld [vmem:[%s979_s0 + $0x10] sm:$0xff]  ;;  %v656_v51 = vpack.c.bf16 %v314_v42, %v313_v41 }
   0xc   :  { %651 = vmatpush3.bf16.msra.mxu1 %v650_v27  ;;  %621 = vmatprep.subr.bf16.mxu0 %v620_v31  ;;  %v297_v46 = vld [vmem:[%s980_s3 + $0x120] sm:$0xff]  ;;  %v298_v47 = vld [vmem:[%s980_s3 + $0x128] sm:$0xff]  ;;  %v283_v49 = vld [vmem:[%s980_s3 + $0xb0] sm:$0xff]  ;;  %v626_v55 = vpack.c.bf16 %v266_v45, %v265_v43 }
   0xd   :  { %512 = vmatmul.mubr.msk.f32.gmra.mrb[2].mxu0 %vm54_vm0, %v21_v21  ;;  %v284_v50 = vld [vmem:[%s980_s3 + $0xb8] sm:$0xff]  ;;  %653 = vmatprep.subr.bf16.mxu1 %v652_v35  ;;  %v315_v52 = vld [vmem:[%s980_s3 + $0x1b0] sm:$0xff]  ;;  %v658_v56 = vpack.c.bf16 %v298_v47, %v297_v46  ;;  %v285_v62 = vld [vmem:[%s980_s3 + $0xc0] sm:$0xff] }
   0xe   :  { %516 = vmatmul.mubr.msk.f32.gmra.mrb[2].mxu1 %vm54_vm0, %v21_v21  ;;  %143 = vmatprep.mubr.f32.mxu0 %v681_v3  ;;  %v316_v53 = vld [vmem:[%s980_s3 + $0x1b8] sm:$0xff]  ;;  %v267_v57 = vld [vmem:[%s980_s3 + $0x30] sm:$0xff]  ;;  %v628_v59 = vpack.c.bf16 %v284_v50, %v283_v49  ;;  %v286_v0 = vld [vmem:[%s980_s3 + $0xc8] sm:$0xff]  ;;  %v34_v49 = vlaneseq }
   0xf   :  { %232 = vmatprep.mubr.f32.mxu1 %v681_v3  ;;  %v23_v54 = vld [vmem:[%s979_s0 + $0x18] sm:$0xff]  ;;  %623 = vmatpush3.bf16.msra.mxu0 %v622_v39  ;;  %v299_v60 = vld [vmem:[%s980_s3 + $0x130] sm:$0xff]  ;;  %v660_v63 = vpack.c.bf16 %v316_v53, %v315_v52  ;;  %v317_v1 = vld [vmem:[%s980_s3 + $0x1c0] sm:$0xff]  ;;  %v632_v8 = vpack.c.bf16 %v286_v0, %v285_v62 }
  0x10   :  { %655 = vmatpush3.bf16.msra.mxu1 %v654_v40  ;;  %v268_v58 = vld [vmem:[%s980_s3 + $0x38] sm:$0xff]  ;;  %625 = vmatprep.subr.bf16.mxu0 %v624_v44  ;;  %v318_v2 = vld [vmem:[%s980_s3 + $0x1c8] sm:$0xff]  ;;  %v269_v6 = vld [vmem:[%s980_s3 + $0x40] sm:$0xff]  ;;  %v35_v50 = vshrl.u32 %v34_v49, 7 }
  0x11   :  { %513 = vmatmul.mubr.msk.f32.gmra.mrb[4].mxu0 %vm54_vm0, %v22_v48  ;;  %v300_v61 = vld [vmem:[%s980_s3 + $0x138] sm:$0xff]  ;;  %657 = vmatprep.subr.bf16.mxu1 %v656_v51  ;;  %v630_v4 = vpack.c.bf16 %v268_v58, %v267_v57  ;;  %v270_v7 = vld [vmem:[%s980_s3 + $0x48] sm:$0xff]  ;;  %v664_v9 = vpack.c.bf16 %v318_v2, %v317_v1  ;;  %v287_v11 = vld [vmem:[%s980_s3 + $0xd0] sm:$0xff] }
  0x12   :  { %517 = vmatmul.mubr.msk.f32.gmra.mrb[4].mxu1 %vm54_vm0, %v22_v48  ;;  %149 = vmatprep.mubr.f32.mxu0 %v681_v3  ;;  %v662_v5 = vpack.c.bf16 %v300_v61, %v299_v60  ;;  %v302_v10 = vld [vmem:[%s980_s3 + $0x148] sm:$0xff]  ;;  %v288_v12 = vld [vmem:[%s980_s3 + $0xd8] sm:$0xff]  ;;  %v319_v13 = vld [vmem:[%s980_s3 + $0x1d0] sm:$0xff]  ;;  %v634_v15 = vpack.c.bf16 %v270_v7, %v269_v6  ;;  %v36_v51 = vsub.s32 0, %v35_v50  ;;  %v44_v53 = vsub.s32 2, %v35_v50 }
  0x13   :  { %238 = vmatprep.mubr.f32.mxu1 %v681_v3  ;;  %627 = vmatpush3.bf16.msra.mxu0 %v626_v55  ;;  %v301_v3 = vld [vmem:[%s980_s3 + $0x140] sm:$0xff]  ;;  %v320_v14 = vld [vmem:[%s980_s3 + $0x1d8] sm:$0xff]  ;;  %v271_v17 = vld [vmem:[%s980_s3 + $0x50] sm:$0xff]  ;;  %v636_v19 = vpack.c.bf16 %v288_v12, %v287_v11  ;;  %v48_v55 = vsub.s32 3, %v35_v50 }
  0x14   :  { %659 = vmatpush3.bf16.msra.mxu1 %v658_v56  ;;  %629 = vmatprep.subr.bf16.mxu0 %v628_v59  ;;  %v666_v16 = vpack.c.bf16 %v302_v10, %v301_v3  ;;  %v272_v18 = vld [vmem:[%s980_s3 + $0x58] sm:$0xff]  ;;  %v668_v20 = vpack.c.bf16 %v320_v14, %v319_v13  ;;  %v303_v21 = vld [vmem:[%s980_s3 + $0x150] sm:$0xff]  ;;  %v289_v23 = vld [vmem:[%s980_s3 + $0xe0] sm:$0xff] }
  0x15   :  { %514 = vmatmul.mubr.msk.f32.gmra.mrb[6].mxu0 %vm54_vm0, %v23_v54  ;;  %661 = vmatprep.subr.bf16.mxu1 %v660_v63  ;;  %v304_v22 = vld [vmem:[%s980_s3 + $0x158] sm:$0xff]  ;;  %v290_v24 = vld [vmem:[%s980_s3 + $0xe8] sm:$0xff]  ;;  %v321_v25 = vld [vmem:[%s980_s3 + $0x1e0] sm:$0xff]  ;;  %v638_v27 = vpack.c.bf16 %v272_v18, %v271_v17 }
  0x16   :  { %518 = vmatmul.mubr.msk.f32.gmra.mrb[6].mxu1 %vm54_vm0, %v23_v54  ;;  %v322_v26 = vld [vmem:[%s980_s3 + $0x1e8] sm:$0xff]  ;;  %v670_v28 = vpack.c.bf16 %v304_v22, %v303_v21  ;;  %v640_v29 = vpack.c.bf16 %v290_v24, %v289_v23  ;;  %v273_v31 = vld [vmem:[%s980_s3 + $0x60] sm:$0xff]  ;;  %v291_v37 = vld [vmem:[%s980_s3 + $0xf0] sm:$0xff]  ;;  %v40_v54 = vsub.s32 1, %v35_v50 }
  0x17   :  { %631 = vmatpush3.bf16.msra.mxu0 %v630_v4  ;;  %v672_v30 = vpack.c.bf16 %v322_v26, %v321_v25  ;;  %v274_v32 = vld [vmem:[%s980_s3 + $0x68] sm:$0xff]  ;;  %v305_v33 = vld [vmem:[%s980_s3 + $0x160] sm:$0xff]  ;;  %v292_v38 = vld [vmem:[%s980_s3 + $0xf8] sm:$0xff] }
  0x18   :  { %663 = vmatpush3.bf16.msra.mxu1 %v662_v5  ;;  %633 = vmatprep.subr.bf16.mxu0 %v632_v8  ;;  %v642_v34 = vpack.c.bf16 %v274_v32, %v273_v31  ;;  %v306_v35 = vld [vmem:[%s980_s3 + $0x168] sm:$0xff]  ;;  %v323_v39 = vld [vmem:[%s980_s3 + $0x1f0] sm:$0xff]  ;;  %v644_v40 = vpack.c.bf16 %v292_v38, %v291_v37  ;;  %v324_v41 = vld [vmem:[%s980_s3 + $0x1f8] sm:$0xff] }
  0x19   :  { %665 = vmatprep.subr.bf16.mxu1 %v664_v9  ;;  %v674_v36 = vpack.c.bf16 %v306_v35, %v305_v33  ;;  %v275_v42 = vld [vmem:[%s980_s3 + $0x70] sm:$0xff]  ;;  %v276_v43 = vld [vmem:[%s980_s3 + $0x78] sm:$0xff]  ;;  %v676_v44 = vpack.c.bf16 %v324_v41, %v323_v39  ;;  %v32_v52 = vld [vmem:[%s981_s2] sm:$0xf] }
  0x1a   :  { %v646_v45 = vpack.c.bf16 %v276_v43, %v275_v42  ;;  %v307_v46 = vld [vmem:[%s980_s3 + $0x170] sm:$0xff]  ;;  %v308_v47 = vld [vmem:[%s980_s3 + $0x178] sm:$0xff]  ;;  %v37_v56 = vrot.slane %v32_v52, %v36_v51  ;;  %v45_v57 = vrot.slane %v32_v52, %v44_v53  ;;  %v41_v58 = vrot.slane %v32_v52, %v40_v54 }
  0x1b   :  { %635 = vmatpush3.bf16.msra.mxu0 %v634_v15  ;;  %v678_v48 = vpack.c.bf16 %v308_v47, %v307_v46  ;;  %v49_v59 = vrot.slane %v32_v52, %v48_v55  ;;  %v519_v46 = vld [vmem:[%s982_s4] ss:$0 sm:$0xff] }
  0x1c   :  { %667 = vmatpush3.bf16.msra.mxu1 %v666_v16  ;;  %637 = vmatprep.subr.bf16.mxu0 %v636_v19 }
  0x1d   :  { %669 = vmatprep.subr.bf16.mxu1 %v668_v20 }
  0x1f   :  { %639 = vmatpush3.bf16.msra.mxu0 %v638_v27 }
  0x20   :  { %671 = vmatpush3.bf16.msra.mxu1 %v670_v28  ;;  %641 = vmatprep.subr.bf16.mxu0 %v640_v29 }
  0x21   :  { %673 = vmatprep.subr.bf16.mxu1 %v672_v30 }
  0x23   :  { %643 = vmatpush3.bf16.msra.mxu0 %v642_v34 }
  0x24   :  { %675 = vmatpush3.bf16.msra.mxu1 %v674_v36  ;;  %645 = vmatprep.subr.bf16.mxu0 %v644_v40 }
  0x25   :  { %677 = vmatprep.subr.bf16.mxu1 %v676_v44 }
  0x27   :  { %647 = vmatpush3.bf16.msra.mxu0 %v646_v45 }
  0x28   :  { %679 = vmatpush3.bf16.msra.mxu1 %v678_v48 }
  0xdc   :  { %v133_v60 = vpop.f32.mrb[0].mxu0 }
  0xdd   :  { %v134_v61 = vadd.f32 %v133_v60, %v37_v56  ;;  %v222_v62 = vpop.f32.mrb[0].mxu1  ;;  %v135_v63 = vpop.f32.mrb[1].mxu0 }
  0xde   :  { %v223_v0 = vadd.f32 %v222_v62, %v45_v57  ;;  %v136_v1 = vadd.f32 %v135_v63, %v41_v58  ;;  %v224_v2 = vpop.f32.mrb[1].mxu1 }
  0xdf   :  { %v225_v4 = vadd.f32 %v224_v2, %v49_v59  ;;  %v245_v8 = vmax.f32 %v134_v61, 0.0 }
  0xe0   :  { %v247_v5 = vmax.f32 %v223_v0, 0.0  ;;  %v246_v6 = vmax.f32 %v136_v1, 0.0  ;;  %v139_v7 = vpop.f32.mrb[2].mxu0 }
  0xe1   :  { %v248_v9 = vmax.f32 %v225_v4, 0.0  ;;  %v140_v3 = vadd.f32 %v139_v7, %v37_v56  ;;  %v228_v10 = vpop.f32.mrb[2].mxu1  ;;  %v141_v11 = vpop.f32.mrb[3].mxu0 }
  0xe2   :  { %v229_v12 = vadd.f32 %v228_v10, %v45_v57  ;;  %v142_v13 = vadd.f32 %v141_v11, %v41_v58  ;;  %v230_v14 = vpop.f32.mrb[3].mxu1  ;;  %396 = vmatprep.mubr.f32.mxu0 %v246_v6 }
  0xe3   :  { %v231_v15 = vadd.f32 %v230_v14, %v49_v59  ;;  %481 = vmatprep.mubr.f32.mxu1 %v248_v9  ;;  %397 = vmatmul.mubr.f32.vlgmr.msra.gmra.mrb[8].mxu0 %v245_v8  ;;  %v249_v19 = vmax.f32 %v140_v3, 0.0 }
  0xe4   :  { %v251_v16 = vmax.f32 %v229_v12, 0.0  ;;  %v250_v17 = vmax.f32 %v142_v13, 0.0  ;;  %482 = vmatmul.mubr.f32.vlgmr.msra.gmra.mrb[8].mxu1 %v247_v5  ;;  %v145_v18 = vpop.f32.mrb[4].mxu0 }
  0xe5   :  { %v252_v20 = vmax.f32 %v231_v15, 0.0  ;;  %v146_v21 = vadd.f32 %v145_v18, %v37_v56  ;;  %v234_v22 = vpop.f32.mrb[4].mxu1  ;;  %v147_v23 = vpop.f32.mrb[5].mxu0 }
  0xe6   :  { %v235_v24 = vadd.f32 %v234_v22, %v45_v57  ;;  %v148_v25 = vadd.f32 %v147_v23, %v41_v58  ;;  %v236_v26 = vpop.f32.mrb[5].mxu1  ;;  %401 = vmatprep.mubr.f32.mxu0 %v250_v17 }
  0xe7   :  { %v237_v27 = vadd.f32 %v236_v26, %v49_v59  ;;  %486 = vmatprep.mubr.f32.mxu1 %v252_v20  ;;  %402 = vmatmul.mubr.f32.gmra.mrb[10].mxu0 %v249_v19  ;;  %v253_v31 = vmax.f32 %v146_v21, 0.0 }
  0xe8   :  { %v255_v28 = vmax.f32 %v235_v24, 0.0  ;;  %v254_v29 = vmax.f32 %v148_v25, 0.0  ;;  %487 = vmatmul.mubr.f32.gmra.mrb[10].mxu1 %v251_v16  ;;  %v151_v30 = vpop.f32.mrb[6].mxu0 }
  0xe9   :  { %v256_v32 = vmax.f32 %v237_v27, 0.0  ;;  %v152_v33 = vadd.f32 %v151_v30, %v37_v56  ;;  %v240_v34 = vpop.f32.mrb[6].mxu1  ;;  %v153_v35 = vpop.f32.mrb[7].mxu0 }
  0xea   :  { %v241_v36 = vadd.f32 %v240_v34, %v45_v57  ;;  %v154_v37 = vadd.f32 %v153_v35, %v41_v58  ;;  %v242_v38 = vpop.f32.mrb[7].mxu1  ;;  %406 = vmatprep.mubr.f32.mxu0 %v254_v29 }
  0xeb   :  { %v243_v39 = vadd.f32 %v242_v38, %v49_v59  ;;  %491 = vmatprep.mubr.f32.mxu1 %v256_v32  ;;  %407 = vmatmul.mubr.f32.gmra.mrb[12].mxu0 %v253_v31  ;;  %v257_v42 = vmax.f32 %v152_v33, 0.0 }
  0xec   :  { %v259_v40 = vmax.f32 %v241_v36, 0.0  ;;  %v258_v41 = vmax.f32 %v154_v37, 0.0  ;;  %492 = vmatmul.mubr.f32.gmra.mrb[12].mxu1 %v255_v28 }
  0xed   :  { %v260_v43 = vmax.f32 %v243_v39, 0.0 }
  0xee   :  { %411 = vmatprep.mubr.f32.mxu0 %v258_v41 }
  0xef   :  { %496 = vmatprep.mubr.f32.mxu1 %v260_v43  ;;  %412 = vmatmul.mubr.f32.gmra.mrb[14].mxu0 %v257_v42 }
  0xf0   :  { %497 = vmatmul.mubr.f32.gmra.mrb[14].mxu1 %v259_v40 }
 0x1b6   :  { %v552_v44 = vpop.f32.mrb[8].mxu0 }
 0x1b7   :  { %v596_v45 = vpop.f32.mrb[8].mxu1  ;;  %v553_v47 = vpop.f32.mrb[9].mxu0 }
 0x1b8   :  { %v554_v48 = vadd.f32 %v553_v47, %v552_v44  ;;  %v597_v49 = vpop.f32.mrb[9].mxu1 }
 0x1b9   :  { %v598_v50 = vadd.f32 %v597_v49, %v596_v45 }
 0x1ba   :  { %v399_v51 = vadd.f32 %v554_v48, %v519_v46  ;;  %v555_v52 = vpop.f32.mrb[10].mxu0 }
 0x1bb   :  { %v599_v53 = vpop.f32.mrb[10].mxu1  ;;  %v556_v54 = vpop.f32.mrb[11].mxu0 }
 0x1bc   :  { %v484_v55 = vadd.f32 %v598_v50, %v399_v51  ;;  %v557_v56 = vadd.f32 %v556_v54, %v555_v52  ;;  %v600_v57 = vpop.f32.mrb[11].mxu1 }
 0x1bd   :  { %v601_v58 = vadd.f32 %v600_v57, %v599_v53 }
 0x1be   :  { %503 = vst.msk [vmem:[%s983_s5] sm:$0xff] %vm502_vm1, %v484_v55  ;;  %v404_v59 = vadd.f32 %v557_v56, %v519_v46  ;;  %v558_v60 = vpop.f32.mrb[12].mxu0 }
 0x1bf   :  { %v602_v61 = vpop.f32.mrb[12].mxu1  ;;  %v559_v62 = vpop.f32.mrb[13].mxu0 }
 0x1c0   :  { %v489_v63 = vadd.f32 %v601_v58, %v404_v59  ;;  %v560_v0 = vadd.f32 %v559_v62, %v558_v60  ;;  %v603_v1 = vpop.f32.mrb[13].mxu1 }
 0x1c1   :  { %v604_v2 = vadd.f32 %v603_v1, %v602_v61 }
 0x1c2   :  { %504 = vst.msk [vmem:[%s983_s5 + $0x8] sm:$0xff] %vm502_vm1, %v489_v63  ;;  %v409_v4 = vadd.f32 %v560_v0, %v519_v46  ;;  %v561_v5 = vpop.f32.mrb[14].mxu0 }
 0x1c3   :  { %v605_v6 = vpop.f32.mrb[14].mxu1  ;;  %v562_v7 = vpop.f32.mrb[15].mxu0 }
 0x1c4   :  { %v494_v8 = vadd.f32 %v604_v2, %v409_v4  ;;  %v563_v9 = vadd.f32 %v562_v7, %v561_v5  ;;  %v606_v3 = vpop.f32.mrb[15].mxu1 }
 0x1c5   :  { %v607_v10 = vadd.f32 %v606_v3, %v605_v6 }
 0x1c6   :  { %505 = vst.msk [vmem:[%s983_s5 + $0x10] sm:$0xff] %vm502_vm1, %v494_v8  ;;  %v414_v11 = vadd.f32 %v563_v9, %v519_v46 }
 0x1c8   :  { %v499_v12 = vadd.f32 %v607_v10, %v414_v11 }
 0x1ca   :  { %506 = vst.msk [vmem:[%s983_s5 + $0x18] sm:$0xff] %vm502_vm1, %v499_v12 }

</bundles_post_ra>
